<compile_context>
chip_gen: v7x
topology: tpu7x:2x2x1
jax: 0.10.0
libtpu: 0.0.40
codegen_flags: <defaults>
</compile_context>

<pallas_src>
import functools

import jax
import jax.numpy as jnp
from jax.experimental import pallas as pl
from jax.experimental.pallas import tpu as pltpu

_LANES = 128            # vreg lane width — last dim of the kernel view
_TILE_ROWS = 512        # rows per grid step (512 x 128 x 4B = 256 KiB / buffer)


def _identity_kernel(x_ref, o_ref):
    # Pure copy: one pipelined VMEM tile in, same tile out.
    o_ref[...] = x_ref[...]


def identity_aug_forward(x, *, tile_rows=_TILE_ROWS):
    """IdentityAug.forward: returns x unchanged (copied through a Pallas kernel)."""
    orig_shape = x.shape
    total = x.size

    # Pack into a lane-dense 2-D view: (rows, 128).  Only pad the flat tail if
    # the element count is not a multiple of 128 (no full-tensor pad copies).
    rows = pl.cdiv(total, _LANES)
    pad = rows * _LANES - total
    flat = x.reshape(-1)
    if pad:
        flat = jnp.pad(flat, (0, pad))
    x2 = flat.reshape(rows, _LANES)

    # Tile the row axis.  If we tile (tm != rows) keep tm a multiple of 8
    # (sublane constraint); a ragged last tile is handled by Pallas masking.
    tm = min(tile_rows, rows)
    if tm != rows:
        tm = max(8, (tm // 8) * 8)
    grid = (pl.cdiv(rows, tm),)

    itemsize = jnp.dtype(x2.dtype).itemsize
    cost = pl.CostEstimate(
        flops=0,
        transcendentals=0,
        bytes_accessed=2 * rows * _LANES * itemsize,
    )

    out2 = pl.pallas_call(
        _identity_kernel,
        grid=grid,
        in_specs=[pl.BlockSpec((tm, _LANES), lambda i: (i, 0))],
        out_specs=pl.BlockSpec((tm, _LANES), lambda i: (i, 0)),
        out_shape=jax.ShapeDtypeStruct((rows, _LANES), x2.dtype),
        compiler_params=pltpu.CompilerParams(
            # Independent tiles -> megacore sharding on v7x; no-op on v5e/v6e.
            dimension_semantics=("parallel",),
        ),
        cost_estimate=cost,
    )(x2)

    flat_out = out2.reshape(-1)
    if pad:
        flat_out = flat_out[:total]
    return flat_out.reshape(orig_shape)


def identity_aug_output_shape(input_shape):
    """IdentityAug.output_shape: identity on the shape."""
    return input_shape


if __name__ == "__main__":
    key = jax.random.PRNGKey(0)
    # Small input consistent with an image-augmentation module: NCHW (2, 4, 16, 16).
    x = jax.random.normal(key, (2, 4, 16, 16), jnp.float32)

    fwd = jax.jit(functools.partial(identity_aug_forward, tile_rows=_TILE_ROWS))
    out = fwd(x)
    out = jax.block_until_ready(out)

    assert out.shape == identity_aug_output_shape(x.shape), out.shape
    assert out.dtype == x.dtype
    # Identity must be bit-exact.
    assert bool(jnp.array_equal(out, x)), "identity output mismatch"
    print("KERNEL_OK")
</pallas_src>

<mosaic_0001>
module attributes {stable_mosaic.version = 11 : i64} {
  func.func @_identity_kernel(%arg0: i32, %arg1: memref<16x128xf32, #tpu.memory_space<vmem>>, %arg2: memref<16x128xf32, #tpu.memory_space<vmem>>) attributes {dimension_semantics = [#tpu.dimension_semantics<parallel>], iteration_bounds = array<i64: 1>, scalar_prefetch = 0 : i64, scratch_operands = 0 : i64, tpu.core_type = #tpu.core_type<tc>, window_params = [{transform_indices = @transform_0, window_bounds = array<i64: 16, 128>}, {transform_indices = @transform_1, window_bounds = array<i64: 16, 128>}]} {
    %c0 = arith.constant 0 : index
    %c0_0 = arith.constant 0 : index
    %0 = vector.load %arg1[%c0, %c0_0] : memref<16x128xf32, #tpu.memory_space<vmem>>, vector<16x128xf32>
    %c0_1 = arith.constant 0 : index
    %c0_2 = arith.constant 0 : index
    %1 = vector.load %arg2[%c0_1, %c0_2] : memref<16x128xf32, #tpu.memory_space<vmem>>, vector<16x128xf32>
    tpu.vector_store %arg2[%c0_1, %c0_2], %0 {strides = array<i32>} : memref<16x128xf32, #tpu.memory_space<vmem>>, vector<16x128xf32>,
    return
  }
  func.func @transform_0(%arg0: i32) -> (i32, i32) {
    %c0_i32 = arith.constant 0 : i32
    %c0_i32_0 = arith.constant 0 : i32
    return %arg0, %c0_i32 : i32, i32
  }
  func.func @transform_1(%arg0: i32) -> (i32, i32) {
    %c0_i32 = arith.constant 0 : i32
    %c0_i32_0 = arith.constant 0 : i32
    return %arg0, %c0_i32 : i32, i32
  }
}

</mosaic_0001>

<bundles_post_ra>
// kernel: identity_aug_forward.1
= control target key start
LH: loop header
LB: loop body
LE: loop exit
PB: predicated region body
PF: predicated region fallthrough
CT: control target
= control target key end

     0   :  { %s38_s0 = inlined_call_operand.vmem [shape: f32[16,128], index: 0, kind: input, shape index: {}]   ;;  %s39_s1 = inlined_call_operand.vmem [shape: f32[16,128], index: 1, kind: output, shape index: {}]  }
   0x1   :  { %v8_v0 = vld [vmem:[%s38_s0] sm:$0xff]  ;;  %v9_v1 = vld [vmem:[%s38_s0 + $0x8] sm:$0xff] }
   0x2   :  { %10 = vst [vmem:[%s39_s1] sm:$0xff] %v8_v0  ;;  %11 = vst [vmem:[%s39_s1 + $0x8] sm:$0xff] %v9_v1 }

</bundles_post_ra>
